<compile_context>
chip_gen: v7x
topology: tpu7x:2x2x1
jax: 0.10.0
libtpu: 0.0.40
codegen_flags: <defaults>
</compile_context>

<pallas_src>
import functools
import numpy as np
import jax
import jax.numpy as jnp
from jax.experimental import pallas as pl
from jax.experimental.pallas import tpu as pltpu


def cal_dconv_feature(L_in, kernel_size, stride, padding, dilation, output_padding):
    return (L_in - 1) * stride - 2 * padding + dilation * (kernel_size - 1) + output_padding + 1


def _round_up(v, m):
    return (v + m - 1) // m * m


def decoder_kernel(x_ref, w_ref, gamma_ref, beta_ref, o_ref, *,
                   plan, slab_rows, bco, count, n_pad_rows, eps):
    """One 128-lane output-channel block: transposed conv (one wide matmul over all
    taps) + scatter-free residue assembly in vregs + BatchNorm(train stats) + ReLU."""
    x = x_ref[...]                                              # (R_in_p, Ci_p) bf16
    w = w_ref[...]                                              # (Ci_p, K*bco) bf16

    # --- ConvTranspose1d: single wide MXU matmul over all K taps ---------------
    t = jnp.dot(x, w, preferred_element_type=jnp.float32)       # (R_in_p, K*bco) f32

    # --- assemble residue slabs functionally (no VMEM scratch RMW) --------------
    # plan: one entry per (batch, residue) slab, each a tuple of
    #       (tap k, source row start in t, row count, destination top padding).
    slabs = []
    for segs in plan:
        contribs = []
        for k, src_lo, cnt, pad_top in segs:
            piece = t[src_lo:src_lo + cnt, k * bco:(k + 1) * bco]   # lane-aligned col slice
            pad_bot = slab_rows - pad_top - cnt
            parts = []
            if pad_top:
                parts.append(jnp.zeros((pad_top, bco), jnp.float32))
            parts.append(piece)
            if pad_bot:
                parts.append(jnp.zeros((pad_bot, bco), jnp.float32))
            contribs.append(parts[0] if len(parts) == 1 else jnp.concatenate(parts, axis=0))
        if not contribs:
            slab = jnp.zeros((slab_rows, bco), jnp.float32)
        else:
            slab = contribs[0]
            for c in contribs[1:]:
                slab = slab + c
        slabs.append(slab)
    # slab_rows is a multiple of 8 -> all slab concat boundaries are sublane-aligned.
    y = slabs[0] if len(slabs) == 1 else jnp.concatenate(slabs, axis=0)   # (R_out_p, bco) f32

    # --- BatchNorm1d (training batch stats, biased variance) + ReLU -------------
    # Padding rows are guaranteed exactly zero by the plan bounds, so the
    # pad-row correction below is exact (see builder invariant).
    mean = jnp.sum(y, axis=0, keepdims=True) * (1.0 / count)    # (1, bco)
    centered = y - mean
    ssd = jnp.sum(centered * centered, axis=0, keepdims=True)
    ssd = ssd - n_pad_rows * (mean * mean)
    var = ssd * (1.0 / count)
    inv_std = jax.lax.rsqrt(var + eps)                          # EUP slot, ~free
    scale = gamma_ref[...] * inv_std
    shift = beta_ref[...] - mean * scale
    o_ref[...] = jnp.maximum(y * scale + shift, jnp.float32(0.0)).astype(o_ref.dtype)
    # TODO(synk): BatchNorm1d running_mean/running_var buffer updates (training
    #             side effect) are not materialized; only the forward output is.


def make_decoder_forward(weight, gamma, beta, *, N, L_in, stride, padding, dilation,
                         L_out, eps=1e-5, compute_dtype=jnp.bfloat16,
                         out_dtype=jnp.bfloat16, block_co=128):
    """Builds a jitted forward(x) for fixed params/shapes.
    weight: (C_in, C_out, K) (ConvTranspose1d layout); gamma/beta: (C_out,).
    Returned forward: x (N, C_in, L_in) -> (N, C_out, L_out) float32."""
    weight = np.asarray(weight, dtype=np.float32)
    gamma = np.asarray(gamma, dtype=np.float32)
    beta = np.asarray(beta, dtype=np.float32)
    C_in, C_out, K = weight.shape

    Ci_p = _round_up(C_in, 8)
    Co_p = _round_up(C_out, block_co)
    L_sub = -(-L_out // stride)                    # ceil(L_out / stride)
    L_sub_p = _round_up(max(L_sub, 1), 8)          # 8-aligned residue slabs
    R_in = N * L_in
    R_in_p = _round_up(R_in, 16)                   # bf16 sublane packing friendly
    R_out_p = N * stride * L_sub_p
    n_pad_rows = R_out_p - N * L_out

    # ---- static shift plan (host-side python) ---------------------------------
    # Output element l = j*stride + r receives x[:, :, i] @ w[:, :, k] whenever
    # l = i*stride - padding + k*dilation; i.e. tap k belongs to residue r and
    # lands at slab row j = i + q with q = (k*dilation - padding) // stride.
    # Invariant: i_hi is capped so j never reaches a padding row -> pad rows == 0.
    plan = []
    for n in range(N):
        for r in range(stride):
            segs = []
            for k in range(K):
                off = k * dilation - padding
                if off % stride != r:
                    continue
                q = off // stride
                i_lo = max(0, -q)                                   # keep l >= 0
                i_hi = min(L_in, (L_out - 1 - off) // stride + 1)   # keep l <= L_out-1
                if i_hi <= i_lo:
                    continue
                segs.append((k, n * L_in + i_lo, i_hi - i_lo, i_lo + q))
            plan.append(tuple(segs))
    plan = tuple(plan)

    # ---- parameter layout prep (hoisted: done once, not per call) -------------
    # w3[jb, ci, k*bco + c] = weight[ci, jb*bco + c, k]  (tap-major lane groups)
    w_t = np.transpose(weight, (0, 2, 1))                           # (Ci, K, Co)
    w_t = np.pad(w_t, ((0, Ci_p - C_in), (0, 0), (0, Co_p - C_out)))
    w_t = w_t.reshape(Ci_p, K, Co_p // block_co, block_co)
    w3 = np.ascontiguousarray(np.transpose(w_t, (2, 0, 1, 3))).reshape(
        Co_p // block_co, Ci_p, K * block_co)
    w3 = jnp.asarray(w3, dtype=compute_dtype)
    gamma2 = jnp.asarray(np.pad(gamma, (0, Co_p - C_out)).reshape(1, Co_p))
    beta2 = jnp.asarray(np.pad(beta, (0, Co_p - C_out)).reshape(1, Co_p))

    kernel = functools.partial(
        decoder_kernel, plan=plan, slab_rows=L_sub_p, bco=block_co,
        count=float(N * L_out), n_pad_rows=float(n_pad_rows), eps=float(eps))

    conv_bn_relu = pl.pallas_call(
        kernel,
        out_shape=jax.ShapeDtypeStruct((R_out_p, Co_p), out_dtype),
        grid=(Co_p // block_co,),
        in_specs=[
            pl.BlockSpec((R_in_p, Ci_p), lambda j: (0, 0)),                 # x slab (shared)
            pl.BlockSpec((None, Ci_p, K * block_co), lambda j: (j, 0, 0)),  # wide tap weights
            pl.BlockSpec((1, block_co), lambda j: (0, j)),                  # gamma
            pl.BlockSpec((1, block_co), lambda j: (0, j)),                  # beta
        ],
        out_specs=pl.BlockSpec((R_out_p, block_co), lambda j: (0, j)),
        compiler_params=pltpu.CompilerParams(
            # grid is (1,) at Co_p=128: single TC on v7x as well; "parallel" only
            # matters if C_out ever spans multiple 128-lane blocks.
            dimension_semantics=("parallel",),
            vmem_limit_bytes=32 * 1024 * 1024),
    )

    @jax.jit
    def forward(x):
        # layout plumbing: channel-minor rows (batch*length, channels)
        x2 = jnp.transpose(x, (0, 2, 1)).reshape(R_in, C_in)
        x2 = jnp.pad(x2, ((0, R_in_p - R_in), (0, Ci_p - C_in))).astype(compute_dtype)
        out = conv_bn_relu(x2, w3, gamma2, beta2)
        # de-interleave residues: row (n, r, j) -> position l = j*stride + r
        y = out.reshape(N, stride, L_sub_p, Co_p)
        y = jnp.transpose(y, (0, 2, 1, 3)).reshape(N, L_sub_p * stride, Co_p)
        y = y[:, :L_out, :C_out]
        return jnp.transpose(y, (0, 2, 1)).astype(jnp.float32)    # (N, C_out, L_out)

    return forward


def decoder_reference(x, weight, gamma, beta, *, stride, padding, dilation, L_out, eps=1e-5):
    x = np.asarray(x, dtype=np.float64)
    w = np.asarray(weight, dtype=np.float64)
    N, Ci, Li = x.shape
    _, Co, K = w.shape
    y = np.zeros((N, Co, L_out), dtype=np.float64)
    for n in range(N):
        for co in range(Co):
            for ci in range(Ci):
                for i in range(Li):
                    for k in range(K):
                        l = i * stride - padding + k * dilation
                        if 0 <= l < L_out:
                            y[n, co, l] += x[n, ci, i] * w[ci, co, k]
    mean = y.mean(axis=(0, 2), keepdims=True)
    var = y.var(axis=(0, 2), keepdims=True)                 # biased (PyTorch normalization)
    g = np.asarray(gamma, dtype=np.float64).reshape(1, -1, 1)
    b = np.asarray(beta, dtype=np.float64).reshape(1, -1, 1)
    out = (y - mean) / np.sqrt(var + eps) * g + b
    return np.maximum(out, 0.0)


if __name__ == "__main__":
    # module hyper-parameters (small, consistent with decoder.__init__)
    data_len, data_len_match = 16, 33
    inplanes, planes = 4, 8
    kernel_size, stride, padding, dilation, output_padding = 4, 2, 1, 1, 0
    N = 2

    # reproduce the decoder.__init__ output_padding logic
    feature_len = cal_dconv_feature(data_len, kernel_size, stride, padding, dilation, output_padding)
    output_padding = data_len_match - feature_len if data_len_match > feature_len else 0
    L_out = cal_dconv_feature(data_len, kernel_size, stride, padding, dilation, output_padding)

    # deterministic parameter / input init
    key = jax.random.PRNGKey(0)
    kx, kw, kg, kb = jax.random.split(key, 4)
    x = jax.random.normal(kx, (N, inplanes, data_len), dtype=jnp.float32)
    weight = 0.1 * jax.random.normal(kw, (inplanes, planes, kernel_size), dtype=jnp.float32)
    gamma = 1.0 + 0.1 * jax.random.normal(kg, (planes,), dtype=jnp.float32)
    beta = 0.1 * jax.random.normal(kb, (planes,), dtype=jnp.float32)

    forward = make_decoder_forward(weight, gamma, beta, N=N, L_in=data_len,
                                   stride=stride, padding=padding, dilation=dilation,
                                   L_out=L_out)
    out = jax.block_until_ready(forward(x))

    ref = decoder_reference(x, weight, gamma, beta, stride=stride, padding=padding,
                            dilation=dilation, L_out=L_out)
    assert out.shape == (N, planes, L_out), out.shape
    # bf16 matmul operands + bf16 output writeback -> ~1% relative error budget
    np.testing.assert_allclose(np.asarray(out), ref, rtol=2e-2, atol=2e-2)
    print("KERNEL_OK")
</pallas_src>

<mosaic_0001>
module attributes {stable_mosaic.version = 11 : i64} {
  func.func @decoder_kernel(%arg0: i32, %arg1: memref<32x8xbf16, #tpu.memory_space<vmem>>, %arg2: memref<1x8x512xbf16, #tpu.memory_space<vmem>>, %arg3: memref<1x128xf32, #tpu.memory_space<vmem>>, %arg4: memref<1x128xf32, #tpu.memory_space<vmem>>, %arg5: memref<96x128xbf16, #tpu.memory_space<vmem>>) attributes {dimension_semantics = [#tpu.dimension_semantics<parallel>], iteration_bounds = array<i64: 1>, scalar_prefetch = 0 : i64, scratch_operands = 0 : i64, tpu.core_type = #tpu.core_type<tc>, window_params = [{pipeline_mode = #tpu.pipeline_mode<synchronous>, transform_indices = @transform_0, window_bounds = array<i64: 32, 8>}, {transform_indices = @transform_1, window_bounds = array<i64: 1, 8, 512>}, {transform_indices = @transform_2, window_bounds = array<i64: 1, 128>}, {transform_indices = @transform_3, window_bounds = array<i64: 1, 128>}, {transform_indices = @transform_4, window_bounds = array<i64: 96, 128>}]} {
    %c0 = arith.constant 0 : index
    %c0_0 = arith.constant 0 : index
    %0 = vector.load %arg1[%c0, %c0_0] : memref<32x8xbf16, #tpu.memory_space<vmem>>, vector<32x8xbf16>
    %c0_1 = arith.constant 0 : index
    %c0_2 = arith.constant 0 : index
    %c0_3 = arith.constant 0 : index
    %1 = vector.load %arg2[%c0_1, %c0_2, %c0_3] : memref<1x8x512xbf16, #tpu.memory_space<vmem>>, vector<1x8x512xbf16>
    %2 = vector.shape_cast %1 : vector<1x8x512xbf16> to vector<8x512xbf16>
    %cst = arith.constant dense<0.000000e+00> : vector<32x512xf32>
    %3 = tpu.matmul %0, %2, %cst {dimension_numbers = #tpu.dot_dimension_numbers<[1], [0], [0], [1], [0, 0, 1, 1], [], []>} : vector<32x8xbf16>, vector<8x512xbf16>, vector<32x512xf32> -> vector<32x512xf32>
    %4 = vector.extract_strided_slice %3 {offsets = [0, 128], sizes = [16, 128], strides = [1, 1]} : vector<32x512xf32> to vector<16x128xf32>
    %cst_4 = arith.constant 0.000000e+00 : f32
    %5 = vector.broadcast %cst_4 : f32 to vector<8x128xf32>
    %6 = tpu.concatenate %4, %5 in 0 : vector<16x128xf32>, vector<8x128xf32> -> vector<24x128xf32>
    %7 = vector.extract_strided_slice %3 {offsets = [0, 384], sizes = [16, 128], strides = [1, 1]} : vector<32x512xf32> to vector<16x128xf32>
    %cst_5 = arith.constant 0.000000e+00 : f32
    %8 = vector.broadcast %cst_5 : f32 to vector<1x128xf32>
    %cst_6 = arith.constant 0.000000e+00 : f32
    %9 = vector.broadcast %cst_6 : f32 to vector<7x128xf32>
    %10 = tpu.concatenate %8, %7, %9 in 0 : vector<1x128xf32>, vector<16x128xf32>, vector<7x128xf32> -> vector<24x128xf32>
    %11 = arith.addf %6, %10 : vector<24x128xf32>
    %12 = vector.extract_strided_slice %3 {offsets = [1, 0], sizes = [15, 128], strides = [1, 1]} : vector<32x512xf32> to vector<15x128xf32>
    %cst_7 = arith.constant 0.000000e+00 : f32
    %13 = vector.broadcast %cst_7 : f32 to vector<9x128xf32>
    %14 = tpu.concatenate %12, %13 in 0 : vector<15x128xf32>, vector<9x128xf32> -> vector<24x128xf32>
    %15 = vector.extract_strided_slice %3 {offsets = [0, 256], sizes = [16, 128], strides = [1, 1]} : vector<32x512xf32> to vector<16x128xf32>
    %cst_8 = arith.constant 0.000000e+00 : f32
    %16 = vector.broadcast %cst_8 : f32 to vector<8x128xf32>
    %17 = tpu.concatenate %15, %16 in 0 : vector<16x128xf32>, vector<8x128xf32> -> vector<24x128xf32>
    %18 = arith.addf %14, %17 : vector<24x128xf32>
    %19 = vector.extract_strided_slice %3 {offsets = [16, 128], sizes = [16, 128], strides = [1, 1]} : vector<32x512xf32> to vector<16x128xf32>
    %cst_9 = arith.constant 0.000000e+00 : f32
    %20 = vector.broadcast %cst_9 : f32 to vector<8x128xf32>
    %21 = tpu.concatenate %19, %20 in 0 : vector<16x128xf32>, vector<8x128xf32> -> vector<24x128xf32>
    %22 = vector.extract_strided_slice %3 {offsets = [16, 384], sizes = [16, 128], strides = [1, 1]} : vector<32x512xf32> to vector<16x128xf32>
    %cst_10 = arith.constant 0.000000e+00 : f32
    %23 = vector.broadcast %cst_10 : f32 to vector<1x128xf32>
    %cst_11 = arith.constant 0.000000e+00 : f32
    %24 = vector.broadcast %cst_11 : f32 to vector<7x128xf32>
    %25 = tpu.concatenate %23, %22, %24 in 0 : vector<1x128xf32>, vector<16x128xf32>, vector<7x128xf32> -> vector<24x128xf32>
    %26 = arith.addf %21, %25 : vector<24x128xf32>
    %27 = vector.extract_strided_slice %3 {offsets = [17, 0], sizes = [15, 128], strides = [1, 1]} : vector<32x512xf32> to vector<15x128xf32>
    %cst_12 = arith.constant 0.000000e+00 : f32
    %28 = vector.broadcast %cst_12 : f32 to vector<9x128xf32>
    %29 = tpu.concatenate %27, %28 in 0 : vector<15x128xf32>, vector<9x128xf32> -> vector<24x128xf32>
    %30 = vector.extract_strided_slice %3 {offsets = [16, 256], sizes = [16, 128], strides = [1, 1]} : vector<32x512xf32> to vector<16x128xf32>
    %cst_13 = arith.constant 0.000000e+00 : f32
    %31 = vector.broadcast %cst_13 : f32 to vector<8x128xf32>
    %32 = tpu.concatenate %30, %31 in 0 : vector<16x128xf32>, vector<8x128xf32> -> vector<24x128xf32>
    %33 = arith.addf %29, %32 : vector<24x128xf32>
    %34 = tpu.concatenate %11, %18, %26, %33 in 0 : vector<24x128xf32>, vector<24x128xf32>, vector<24x128xf32>, vector<24x128xf32> -> vector<96x128xf32>
    %cst_14 = arith.constant dense<0.000000e+00> : vector<128xf32>
    %35 = vector.multi_reduction <add>, %34, %cst_14 [0] : vector<96x128xf32> to vector<128xf32>
    %36 = vector.shape_cast %35 : vector<128xf32> to vector<1x128xf32>
    %cst_15 = arith.constant 0.0151515156 : f32
    %37 = vector.broadcast %cst_15 : f32 to vector<1x128xf32>
    %38 = arith.mulf %36, %37 : vector<1x128xf32>
    %39 = vector.broadcast %38 : vector<1x128xf32> to vector<96x128xf32>
    %40 = arith.subf %34, %39 : vector<96x128xf32>
    %41 = arith.mulf %40, %40 : vector<96x128xf32>
    %cst_16 = arith.constant dense<0.000000e+00> : vector<128xf32>
    %42 = vector.multi_reduction <add>, %41, %cst_16 [0] : vector<96x128xf32> to vector<128xf32>
    %43 = vector.shape_cast %42 : vector<128xf32> to vector<1x128xf32>
    %44 = arith.mulf %38, %38 : vector<1x128xf32>
    %cst_17 = arith.constant 3.000000e+01 : f32
    %45 = vector.broadcast %cst_17 : f32 to vector<1x128xf32>
    %46 = arith.mulf %45, %44 : vector<1x128xf32>
    %47 = arith.subf %43, %46 : vector<1x128xf32>
    %cst_18 = arith.constant 0.0151515156 : f32
    %48 = vector.broadcast %cst_18 : f32 to vector<1x128xf32>
    %49 = arith.mulf %47, %48 : vector<1x128xf32>
    %cst_19 = arith.constant 9.99999974E-6 : f32
    %50 = vector.broadcast %cst_19 : f32 to vector<1x128xf32>
    %51 = arith.addf %49, %50 : vector<1x128xf32>
    %52 = math.rsqrt %51 : vector<1x128xf32>
    %c0_20 = arith.constant 0 : index
    %c0_21 = arith.constant 0 : index
    %53 = vector.load %arg3[%c0_20, %c0_21] : memref<1x128xf32, #tpu.memory_space<vmem>>, vector<1x128xf32>
    %54 = arith.mulf %53, %52 : vector<1x128xf32>
    %c0_22 = arith.constant 0 : index
    %c0_23 = arith.constant 0 : index
    %55 = vector.load %arg4[%c0_22, %c0_23] : memref<1x128xf32, #tpu.memory_space<vmem>>, vector<1x128xf32>
    %56 = arith.mulf %38, %54 : vector<1x128xf32>
    %57 = arith.subf %55, %56 : vector<1x128xf32>
    %58 = vector.broadcast %54 : vector<1x128xf32> to vector<96x128xf32>
    %59 = arith.mulf %34, %58 : vector<96x128xf32>
    %60 = vector.broadcast %57 : vector<1x128xf32> to vector<96x128xf32>
    %61 = arith.addf %59, %60 : vector<96x128xf32>
    %cst_24 = arith.constant 0.000000e+00 : f32
    %62 = vector.broadcast %cst_24 : f32 to vector<96x128xf32>
    %63 = arith.maximumf %61, %62 : vector<96x128xf32>
    %64 = arith.truncf %63 : vector<96x128xf32> to vector<96x128xbf16>
    %c0_25 = arith.constant 0 : index
    %c0_26 = arith.constant 0 : index
    %65 = vector.load %arg5[%c0_25, %c0_26] : memref<96x128xbf16, #tpu.memory_space<vmem>>, vector<96x128xbf16>
    tpu.vector_store %arg5[%c0_25, %c0_26], %64 {strides = array<i32>} : memref<96x128xbf16, #tpu.memory_space<vmem>>, vector<96x128xbf16>,
    return
  }
  func.func @transform_0(%arg0: i32) -> (i32, i32) {
    %c0_i32 = arith.constant 0 : i32
    %c0_i32_0 = arith.constant 0 : i32
    %c0_i32_1 = arith.constant 0 : i32
    return %c0_i32, %c0_i32_0 : i32, i32
  }
  func.func @transform_1(%arg0: i32) -> (i32, i32, i32) {
    %c0_i32 = arith.constant 0 : i32
    %c0_i32_0 = arith.constant 0 : i32
    %c0_i32_1 = arith.constant 0 : i32
    return %arg0, %c0_i32, %c0_i32_0 : i32, i32, i32
  }
  func.func @transform_2(%arg0: i32) -> (i32, i32) {
    %c0_i32 = arith.constant 0 : i32
    %c0_i32_0 = arith.constant 0 : i32
    return %c0_i32, %arg0 : i32, i32
  }
  func.func @transform_3(%arg0: i32) -> (i32, i32) {
    %c0_i32 = arith.constant 0 : i32
    %c0_i32_0 = arith.constant 0 : i32
    return %c0_i32, %arg0 : i32, i32
  }
  func.func @transform_4(%arg0: i32) -> (i32, i32) {
    %c0_i32 = arith.constant 0 : i32
    %c0_i32_0 = arith.constant 0 : i32
    return %c0_i32, %arg0 : i32, i32
  }
}

</mosaic_0001>

<bundles_post_ra>
// kernel: forward.1
= control target key start
LH: loop header
LB: loop body
LE: loop exit
PB: predicated region body
PF: predicated region fallthrough
CT: control target
= control target key end

     0   :  { %vm51_vm0 = vcmask 1043456   ;;  %v475_v2 = vmov 0   ;;  %vm44_vm1 = vcmask 64512   ;;  %vm172_vm2 = vcmask 1040384   ;;  %s597_s1 = inlined_call_operand.vmem [shape: bf16[1,8,512], index: 1, kind: input, shape index: {}]   ;;  %s598_s0 = inlined_call_operand.vmem [shape: bf16[32,8], index: 0, kind: input, shape index: {}]   ;;  %s599_s2 = inlined_call_operand.vmem [shape: f32[1,128], index: 2, kind: input, shape index: {}]   ;;  %s600_s3 = inlined_call_operand.vmem [shape: f32[1,128], index: 3, kind: input, shape index: {}]   ;;  %s601_s4 = inlined_call_operand.vmem [shape: bf16[96,128], index: 4, kind: output, shape index: {}]  }
   0x1   :  { %v22_v0 = vld [vmem:[%s597_s1] sm:$0xff]  ;;  %v23_v1 = vld [vmem:[%s597_s1 + $0x8] sm:$0xff]  ;;  %96 = vmatprep.mubr.bf16.mxu0 %v475_v2  ;;  %149 = vmatprep.mubr.bf16.mxu1 %v475_v2  ;;  %vm186_vm3 = vcmask 1046528  }
   0x2   :  { %v398_v3 = vcombine.high %v22_v0, %v22_v0  ;;  %v400_v4 = vcombine.high %v23_v1, %v23_v1  ;;  %v397_v5 = vcombine.low %v22_v0, %v22_v0  ;;  %v399_v6 = vcombine.low %v23_v1, %v23_v1  ;;  %v471_v9 = vld [vmem:[%s598_s0] sm:$0xff]   ;;  %v472_v10 = vld [vmem:[%s598_s0 + $0x8] sm:$0xff]  }
   0x4   :  { %401 = vmatprep.subr.msk.bf16.mxu0 %vm51_vm0, %v398_v3  ;;  %404 = vmatprep.subr.msk.bf16.mxu1 %vm51_vm0, %v400_v4  ;;  %v53_v7 = vsel %vm51_vm0, %v397_v5, 0  ;;  %v59_v8 = vsel %vm51_vm0, %v399_v6, 0 }
   0x5   :  { %65 = vmatpush1.bf16.msra.mxu0 %v53_v7  ;;  %118 = vmatpush1.bf16.msra.mxu1 %v59_v8 }
   0x8   :  { %402 = vmatmul.mubr.msk.bf16.vlgmr.msra.gmra.mrb[0].mxu0 %vm44_vm1, %v471_v9  ;;  %405 = vmatmul.mubr.msk.bf16.vlgmr.msra.gmra.mrb[0].mxu1 %vm44_vm1, %v471_v9 }
   0x9   :  { %106 = vmatprep.mubr.bf16.mxu0 %v475_v2  ;;  %159 = vmatprep.mubr.bf16.mxu1 %v475_v2 }
  0x10   :  { %403 = vmatmul.mubr.msk.bf16.gmra.mrb[4].mxu0 %vm44_vm1, %v472_v10  ;;  %406 = vmatmul.mubr.msk.bf16.gmra.mrb[4].mxu1 %vm44_vm1, %v472_v10 }
  0xdb   :  { %v98_v11 = vpop.f32.mrb[0].mxu0  ;;  %v151_v12 = vpop.f32.mrb[0].mxu1 }
  0xdc   :  { %v187_v13 = vrot.slane %v98_v11, 1  ;;  %v100_v14 = vpop.f32.mrb[1].mxu0  ;;  %v153_v15 = vpop.f32.mrb[1].mxu1 }
  0xdd   :  { %v173_v16 = vrot.slane %v153_v15, 7  ;;  %v102_v17 = vpop.f32.mrb[2].mxu0  ;;  %v155_v18 = vpop.f32.mrb[2].mxu1 }
  0xde   :  { %v188_v19 = vrot.slane %v102_v17, 1  ;;  %v104_v20 = vpop.f32.mrb[3].mxu0  ;;  %v157_v21 = vpop.f32.mrb[3].mxu1 }
  0xdf   :  { %v179_v22 = vsel %vm172_vm2, 0.0, %v173_v16  ;;  %v174_v23 = vrot.slane %v157_v21, 7 }
  0xe0   :  { %v514_v24 = vadd.f32 %v179_v22, %v100_v14  ;;  %v189_v25 = vsel %vm186_vm3, %v187_v13, %v188_v19  ;;  %v192_v26 = vsel %vm186_vm3, %v188_v19, 0.0 }
  0xe1   :  { %v518_v27 = vadd.f32 %v189_v25, %v151_v12  ;;  %v520_v28 = vadd.f32 %v192_v26, %v155_v18  ;;  %v175_v29 = vsel %vm172_vm2, %v173_v16, %v174_v23  ;;  %v528_v37 = vsel %vm172_vm2, %v174_v23, 0.0 }
  0xe2   :  { %v523_v30 = vadd.f32 %v175_v29, %v104_v20 }
  0xe3   :  { %v108_v31 = vpop.f32.mrb[4].mxu0  ;;  %v161_v32 = vpop.f32.mrb[4].mxu1 }
  0xe4   :  { %v218_v33 = vadd.f32 %v523_v30, %v514_v24  ;;  %v210_v34 = vrot.slane %v108_v31, 1  ;;  %v110_v35 = vpop.f32.mrb[5].mxu0  ;;  %v163_v36 = vpop.f32.mrb[5].mxu1 }
  0xe5   :  { %v197_v38 = vrot.slane %v163_v36, 7  ;;  %v112_v39 = vpop.f32.mrb[6].mxu0  ;;  %v165_v40 = vpop.f32.mrb[6].mxu1 }
  0xe6   :  { %v219_v41 = vadd.f32 %v218_v33, %v528_v37  ;;  %v211_v42 = vrot.slane %v112_v39, 1  ;;  %v167_v43 = vpop.f32.mrb[7].mxu1  ;;  %v114_v44 = vpop.f32.mrb[7].mxu0 }
  0xe7   :  { %v203_v45 = vsel %vm172_vm2, 0.0, %v197_v38  ;;  %v198_v46 = vrot.slane %v167_v43, 7 }
  0xe8   :  { %v220_v47 = vadd.f32 %v219_v41, %v518_v27  ;;  %v533_v48 = vadd.f32 %v203_v45, %v110_v35  ;;  %v212_v49 = vsel %vm186_vm3, %v210_v34, %v211_v42  ;;  %v215_v50 = vsel %vm186_vm3, %v211_v42, 0.0 }
  0xe9   :  { %v537_v51 = vadd.f32 %v212_v49, %v161_v32  ;;  %v539_v52 = vadd.f32 %v215_v50, %v165_v40  ;;  %v199_v53 = vsel %vm172_vm2, %v197_v38, %v198_v46  ;;  %v548_v58 = vsel %vm172_vm2, %v198_v46, 0.0 }
  0xea   :  { %v221_v54 = vadd.f32 %v220_v47, %v520_v28  ;;  %v543_v55 = vadd.f32 %v199_v53, %v114_v44 }
  0xec   :  { %v223_v56 = vadd.f32 %v221_v54, %v533_v48 }
  0xee   :  { %v224_v57 = vadd.f32 %v223_v56, %v543_v55 }
  0xf0   :  { %v225_v59 = vadd.f32 %v224_v57, %v548_v58 }
  0xf2   :  { %v226_v60 = vadd.f32 %v225_v59, %v537_v51  ;;  %v287_v59 = vlaneseq }
  0xf4   :  { %v227_v61 = vadd.f32 %v226_v60, %v539_v52  ;;  %v288_v60 = vshrl.u32 %v287_v59, 7 }
  0xf6   :  { %v229_v62 = vrot.slane %v227_v61, 4 }
  0xf8   :  { %v230_v63 = vadd.f32 %v229_v62, %v227_v61  ;;  %v281_v61 = vld [vmem:[%s599_s2] sm:$0x1]  ;;  %v289_v62 = vsub.s32 0, %v288_v60 }
  0xfa   :  { %v231_v0 = vrot.slane %v230_v63, 2 }
  0xfc   :  { %v232_v1 = vadd.f32 %v231_v0, %v230_v63 }
  0xfe   :  { %v233_v2 = vrot.slane %v232_v1, 1 }
 0x100   :  { %v234_v3 = vadd.f32 %v233_v2, %v232_v1  ;;  %v283_v1 = vld [vmem:[%s600_s3] sm:$0x1] }
 0x102   :  { %v235_v4 = vmul.f32 0.015151516, %v234_v3 }
 0x104   :  { %v236_v5 = vsub.f32 %v514_v24, %v235_v4  ;;  %v237_v6 = vsub.f32 %v523_v30, %v235_v4  ;;  %v238_v7 = vsub.f32 %v528_v37, %v235_v4  ;;  %v239_v9 = vsub.f32 %v518_v27, %v235_v4 }
 0x105   :  { %v240_v11 = vsub.f32 %v520_v28, %v235_v4  ;;  %v241_v14 = vsub.f32 0.0, %v235_v4  ;;  %v242_v17 = vsub.f32 %v533_v48, %v235_v4  ;;  %v243_v20 = vsub.f32 %v543_v55, %v235_v4 }
 0x106   :  { %v247_v8 = vmul.f32 %v236_v5, %v236_v5  ;;  %v248_v10 = vmul.f32 %v237_v6, %v237_v6  ;;  %v249_v12 = vmul.f32 %v238_v7, %v238_v7  ;;  %v250_v15 = vmul.f32 %v239_v9, %v239_v9 }
 0x107   :  { %v251_v18 = vmul.f32 %v240_v11, %v240_v11  ;;  %v252_v21 = vmul.f32 %v241_v14, %v241_v14  ;;  %v244_v23 = vsub.f32 %v548_v58, %v235_v4  ;;  %v253_v25 = vmul.f32 %v242_v17, %v242_v17 }
 0x108   :  { %v258_v13 = vadd.f32 %v248_v10, %v247_v8  ;;  %v245_v29 = vsub.f32 %v537_v51, %v235_v4  ;;  %v254_v31 = vmul.f32 %v243_v20, %v243_v20  ;;  %v246_v33 = vsub.f32 %v539_v52, %v235_v4 }
 0x109   :  { %v255_v34 = vmul.f32 %v244_v23, %v244_v23  ;;  %v275_v47 = vmul.f32 %v235_v4, %v235_v4 }
 0x10a   :  { %v259_v16 = vadd.f32 %v258_v13, %v249_v12  ;;  %v256_v36 = vmul.f32 %v245_v29, %v245_v29  ;;  %v257_v39 = vmul.f32 %v246_v33, %v246_v33 }
 0x10b   :  { %v276_v53 = vmul.f32 30.0, %v275_v47 }
 0x10c   :  { %v260_v19 = vadd.f32 %v259_v16, %v250_v15 }
 0x10e   :  { %v261_v22 = vadd.f32 %v260_v19, %v251_v18 }
 0x110   :  { %v262_v26 = vadd.f32 %v261_v22, %v252_v21 }
 0x112   :  { %v263_v32 = vadd.f32 %v262_v26, %v253_v25 }
 0x114   :  { %v264_v35 = vadd.f32 %v263_v32, %v254_v31 }
 0x116   :  { %v265_v38 = vadd.f32 %v264_v35, %v255_v34 }
 0x118   :  { %v266_v40 = vadd.f32 %v265_v38, %v256_v36 }
 0x11a   :  { %v267_v41 = vadd.f32 %v266_v40, %v257_v39 }
 0x11c   :  { %v268_v42 = vadd.f32 %v267_v41, %v252_v21 }
 0x11e   :  { %v269_v43 = vrot.slane %v268_v42, 4 }
 0x120   :  { %v270_v44 = vadd.f32 %v269_v43, %v268_v42 }
 0x122   :  { %v271_v45 = vrot.slane %v270_v44, 2 }
 0x124   :  { %v272_v46 = vadd.f32 %v271_v45, %v270_v44 }
 0x126   :  { %v273_v49 = vrot.slane %v272_v46, 1 }
 0x128   :  { %v274_v50 = vadd.f32 %v273_v49, %v272_v46 }
 0x12a   :  { %v277_v54 = vsub.f32 %v274_v50, %v276_v53 }
 0x12c   :  { %v278_v56 = vmul.f32 0.015151516, %v277_v54 }
 0x12e   :  { %v279_v57 = vadd.f32 1e-05, %v278_v56 }
 0x130   :  { %473 = vrsqrt.f32 %v279_v57 }
 0x13a   :  { %v474_v63 = vpop.eup %473 }
 0x13b   :  { %v282_v0 = vmul.f32 %v474_v63, %v281_v61 }
 0x13d   :  { %v284_v2 = vmul.f32 %v282_v0, %v235_v4  ;;  %v290_v3 = vrot.slane %v282_v0, %v289_v62 }
 0x13f   :  { %v285_v5 = vsub.f32 %v283_v1, %v284_v2  ;;  %v292_v6 = vmul.f32 %v290_v3, %v514_v24  ;;  %v293_v7 = vmul.f32 %v290_v3, %v523_v30  ;;  %v294_v8 = vmul.f32 %v290_v3, %v528_v37 }
 0x140   :  { %v295_v9 = vmul.f32 %v290_v3, %v518_v27  ;;  %v296_v10 = vmul.f32 %v290_v3, %v520_v28  ;;  %v297_v11 = vmul.f32 0.0, %v290_v3  ;;  %v298_v12 = vmul.f32 %v290_v3, %v533_v48 }
 0x141   :  { %v307_v13 = vrot.slane %v285_v5, %v289_v62  ;;  %v299_v14 = vmul.f32 %v290_v3, %v543_v55  ;;  %v300_v4 = vmul.f32 %v290_v3, %v548_v58  ;;  %v301_v15 = vmul.f32 %v290_v3, %v537_v51 }
 0x142   :  { %v302_v24 = vmul.f32 %v290_v3, %v539_v52 }
 0x143   :  { %v309_v16 = vadd.f32 %v307_v13, %v292_v6  ;;  %v310_v30 = vadd.f32 %v307_v13, %v293_v7  ;;  %v311_v17 = vadd.f32 %v307_v13, %v294_v8  ;;  %v312_v37 = vadd.f32 %v307_v13, %v295_v9 }
 0x144   :  { %v313_v18 = vadd.f32 %v307_v13, %v296_v10  ;;  %v314_v27 = vadd.f32 %v307_v13, %v297_v11  ;;  %v315_v19 = vadd.f32 %v307_v13, %v298_v12  ;;  %v316_v28 = vadd.f32 %v307_v13, %v299_v14 }
 0x145   :  { %v317_v20 = vadd.f32 %v307_v13, %v300_v4  ;;  %v318_v21 = vadd.f32 %v307_v13, %v301_v15  ;;  %v319_v48 = vadd.f32 %v307_v13, %v302_v24  ;;  %v320_v22 = vmax.f32 %v309_v16, 0.0 }
 0x146   :  { %v321_v23 = vmax.f32 %v310_v30, 0.0  ;;  %v322_v55 = vmax.f32 %v311_v17, 0.0  ;;  %v323_v25 = vmax.f32 %v312_v37, 0.0  ;;  %v324_v58 = vmax.f32 %v313_v18, 0.0 }
 0x147   :  { %v325_v26 = vmax.f32 %v314_v27, 0.0  ;;  %v326_v51 = vmax.f32 %v315_v19, 0.0  ;;  %v327_v29 = vmax.f32 %v316_v28, 0.0  ;;  %v328_v52 = vmax.f32 %v317_v20, 0.0 }
 0x148   :  { %v329_v31 = vmax.f32 %v318_v21, 0.0  ;;  %v330_v32 = vmax.f32 %v319_v48, 0.0  ;;  %v434_v33 = vpack.c.bf16 %v321_v23, %v320_v22  ;;  %v439_v34 = vpack.c.bf16 %v323_v25, %v322_v55 }
 0x149   :  { %v444_v35 = vpack.c.bf16 %v325_v26, %v324_v58  ;;  %v449_v36 = vpack.c.bf16 %v327_v29, %v326_v51 }
 0x14a   :  { %435 = vst [vmem:[%s601_s4] sm:$0xff] %v434_v33   ;;  %461 = vst [vmem:[%s601_s4 + $0x8] sm:$0xff] %v439_v34   ;;  %v454_v38 = vpack.c.bf16 %v329_v31, %v328_v52  ;;  %v459_v39 = vpack.c.bf16 %v325_v26, %v330_v32 }
 0x14b   :  { %462 = vst [vmem:[%s601_s4 + $0x10] sm:$0xff] %v444_v35   ;;  %463 = vst [vmem:[%s601_s4 + $0x18] sm:$0xff] %v449_v36  }
 0x14c   :  { %464 = vst [vmem:[%s601_s4 + $0x20] sm:$0xff] %v454_v38   ;;  %465 = vst [vmem:[%s601_s4 + $0x28] sm:$0xff] %v459_v39  }

</bundles_post_ra>
